<compile_context>
chip_gen: v6e
topology: v6e:2x2x1
jax: 0.10.0
libtpu: 0.0.40
codegen_flags: <defaults>
</compile_context>

<pallas_src>
import jax
import jax.numpy as jnp
from jax.experimental import pallas as pl
from jax.experimental.pallas import tpu as pltpu

EPS = 1e-9  # module epsilon


def _hsv_kernel(thr_ref, x_ref, o_ref):
    # thr_ref: SMEM (3,)  = [color_thr, black_thr, white_thr]
    # x_ref:   VMEM (1, 3, TS, 128) float32 image block
    # o_ref:   VMEM (1, 3, TS, 128) float32 output block
    color_thr = thr_ref[0]
    black_thr = thr_ref[1]
    white_thr = thr_ref[2]

    x = x_ref[0]                 # (3, TS, 128)
    r = x[0]                     # (TS, 128) dense sublane/lane tiles
    g = x[1]
    b = x[2]

    max_c = jnp.maximum(r, jnp.maximum(g, b))
    min_c = jnp.minimum(r, jnp.minimum(g, b))
    c = max_c - min_c
    inv_c = 1.0 / (c + EPS)      # one divide instead of three; reused below

    # torch.max(dim=1) argmax with first-occurrence tie-break.
    arg0 = (r >= g) & (r >= b)
    arg1 = jnp.logical_not(arg0) & (g >= b)
    arg2 = jnp.logical_not(arg0) & jnp.logical_not(arg1)

    # r-max branch: mod(q, 6) for q in (-1, 1) == (q + 6 if q < 0 else q).
    q_r = (g - b) * inv_c
    h_r = jnp.where(q_r < 0.0, q_r + 6.0, q_r)
    h0 = jnp.where(arg0, h_r, 0.0)
    h0 = jnp.where(arg1, (b - r) * inv_c + 2.0, h0)
    h0 = jnp.where(arg2, (r - g) * inv_c + 4.0, h0)     # h0 in [0, 6]

    s = jnp.where(c != 0.0, c / (1.0 - jnp.abs(max_c + min_c - 1.0)), 0.0)
    l = (max_c + min_c) * 0.5

    # hard_sigmoid(v) = clip(v*1000 - 0.01, 0, 1):
    #   == 1.0  <=>  v*1000 - 0.01 >= 1.0
    #   == 0.0  <=>  v*1000 - 0.01 <= 0.0
    # (exactly equivalent, drops the clips and float-equality compares)
    cond = (((s - color_thr) * 1000.0 - 0.01) >= 1.0) \
        & (((black_thr - l) * 1000.0 - 0.01) <= 0.0) \
        & (((l - white_thr) * 1000.0 - 0.01) <= 0.0)

    # Per-output-channel hue transform with n in (5, 3, 1), then select vs L.
    for idx, n in enumerate((5.0, 3.0, 1.0)):
        k = n + h0                               # k in [n, n+6] < 12
        k = jnp.where(k >= 6.0, k - 6.0, k)      # == mod(n + h0, 6)
        hc = 1.0 - jnp.clip(jnp.minimum(k, 4.0 - k), 0.0, 1.0)
        o_ref[0, idx, :, :] = jnp.where(cond, hc, l)   # dense (TS,128) slab store


def _round_up(x, m):
    return ((x + m - 1) // m) * m


def advanced_hsv_alt(image, color_thr=0.04, black_thr=0.1, white_thr=0.9,
                     *, max_rows=1024):
    """Pallas implementation of AdvancedHSValt.forward. image: (N, 3, H, W) f32."""
    n, ch, h, w = image.shape
    assert ch == 3, "AdvancedHSValt expects an RGB (3-channel) NCHW image"
    hw = h * w
    x = image.reshape(n, 3, hw).astype(jnp.float32)

    # Lane-dense layout: pad spatial axis to ROWS x 128 with ROWS a multiple
    # of the sublane-aligned row tile TS.  Small images -> one tile covering
    # the whole image; large images -> 512-row tiles (v6e roofline plateau,
    # well under v7x's smaller VMEM even with multi-buffering).
    rows = -(-hw // 128)
    if rows <= max_rows:
        ts = _round_up(rows, 8)
    else:
        ts = 512
    rows_p = _round_up(rows, ts)
    hw_p = rows_p * 128
    if hw_p != hw:
        x = jnp.pad(x, ((0, 0), (0, 0), (0, hw_p - hw)))
    x = x.reshape(n, 3, rows_p, 128)

    thr = jnp.array([color_thr, black_thr, white_thr], dtype=jnp.float32)

    out = pl.pallas_call(
        _hsv_kernel,
        out_shape=jax.ShapeDtypeStruct((n, 3, rows_p, 128), jnp.float32),
        grid=(n, rows_p // ts),
        in_specs=[
            pl.BlockSpec(memory_space=pltpu.MemorySpace.SMEM),           # thresholds
            pl.BlockSpec((1, 3, ts, 128), lambda i, j: (i, 0, j, 0)),    # image block
        ],
        out_specs=pl.BlockSpec((1, 3, ts, 128), lambda i, j: (i, 0, j, 0)),
        compiler_params=pltpu.CompilerParams(
            dimension_semantics=("parallel", "parallel"),
            vmem_limit_bytes=32 * 1024 * 1024,
        ),
    )(thr, x)

    out = out.reshape(n, 3, hw_p)
    if hw_p != hw:
        out = out[:, :, :hw]
    return out.reshape(n, 3, h, w)


def advanced_hsv_alt_ref(image, color_thr=0.04, black_thr=0.1, white_thr=0.9):
    """Pure-JAX reference mirroring the PyTorch forward exactly."""
    max_c = jnp.max(image, axis=1, keepdims=True)
    max_arg = jnp.argmax(image, axis=1, keepdims=True)
    min_c = jnp.min(image, axis=1, keepdims=True)
    r, g, b = image[:, 0:1], image[:, 1:2], image[:, 2:3]
    c = max_c - min_c
    hh = jnp.where(max_arg == 0, jnp.mod((g - b) / (c + EPS), 6.0), 0.0)
    hh = jnp.where(max_arg == 1, (b - r) / (c + EPS) + 2.0, hh)
    hh = jnp.where(max_arg == 2, (r - g) / (c + EPS) + 4.0, hh)
    s = jnp.where(c != 0, c / (1.0 - jnp.abs(max_c + min_c - 1.0)), 0.0)
    l = (max_c + min_c) / 2.0
    hs = lambda v: jnp.clip(v * 1000.0 - 0.01, 0.0, 1.0)
    chans = []
    for n in (5.0, 3.0, 1.0):
        k = jnp.mod(n + hh[:, 0], 6.0)
        chans.append(1.0 - jnp.clip(jnp.minimum(k, 4.0 - k), 0.0, 1.0))
    hn = jnp.stack(chans, axis=1)
    cond = (hs(s - color_thr) == 1.0) & (hs(black_thr - l) == 0.0) & (hs(l - white_thr) == 0.0)
    return jnp.where(cond, hn, jnp.broadcast_to(l, hn.shape))


if __name__ == "__main__":
    key = jax.random.PRNGKey(0)

    # deterministic RGB-like input in [0, 1), NCHW
    x = jax.random.uniform(key, (2, 3, 16, 16), dtype=jnp.float32)
    out = advanced_hsv_alt(x)
    jax.block_until_ready(out)
    ref = advanced_hsv_alt_ref(x)
    assert out.shape == (2, 3, 16, 16) and out.dtype == jnp.float32
    assert jnp.allclose(out, ref, atol=1e-5, rtol=1e-5), float(jnp.max(jnp.abs(out - ref)))

    # non-128-multiple spatial size exercises the pad/slice path
    x2 = jax.random.uniform(jax.random.PRNGKey(1), (1, 3, 20, 20), dtype=jnp.float32)
    out2 = advanced_hsv_alt(x2)
    jax.block_until_ready(out2)
    ref2 = advanced_hsv_alt_ref(x2)
    assert out2.shape == (1, 3, 20, 20)
    assert jnp.allclose(out2, ref2, atol=1e-5, rtol=1e-5), float(jnp.max(jnp.abs(out2 - ref2)))

    print("KERNEL_OK")
</pallas_src>

<mosaic_0001>
module attributes {stable_mosaic.version = 11 : i64} {
  func.func @_hsv_kernel(%arg0: i32, %arg1: i32, %arg2: memref<3xf32, #tpu.memory_space<smem>>, %arg3: memref<1x3x8x128xf32, #tpu.memory_space<vmem>>, %arg4: memref<1x3x8x128xf32, #tpu.memory_space<vmem>>) attributes {dimension_semantics = [#tpu.dimension_semantics<parallel>, #tpu.dimension_semantics<parallel>], iteration_bounds = array<i64: 2, 1>, scalar_prefetch = 0 : i64, scratch_operands = 0 : i64, tpu.core_type = #tpu.core_type<tc>, window_params = [{transform_indices = @transform_0, window_bounds = array<i64: 3>}, {transform_indices = @transform_1, window_bounds = array<i64: 1, 3, 8, 128>}, {transform_indices = @transform_2, window_bounds = array<i64: 1, 3, 8, 128>}]} {
    %c0 = arith.constant 0 : index
    %0 = memref.load %arg2[%c0] : memref<3xf32, #tpu.memory_space<smem>>
    %c1 = arith.constant 1 : index
    %1 = memref.load %arg2[%c1] : memref<3xf32, #tpu.memory_space<smem>>
    %c2 = arith.constant 2 : index
    %2 = memref.load %arg2[%c2] : memref<3xf32, #tpu.memory_space<smem>>
    %c0_0 = arith.constant 0 : index
    %c0_1 = arith.constant 0 : index
    %c0_2 = arith.constant 0 : index
    %c0_3 = arith.constant 0 : index
    %3 = vector.load %arg3[%c0_0, %c0_1, %c0_2, %c0_3] : memref<1x3x8x128xf32, #tpu.memory_space<vmem>>, vector<1x3x8x128xf32>
    %4 = vector.shape_cast %3 : vector<1x3x8x128xf32> to vector<3x8x128xf32>
    %5 = vector.extract_strided_slice %4 {offsets = [0, 0, 0], sizes = [1, 8, 128], strides = [1, 1, 1]} : vector<3x8x128xf32> to vector<1x8x128xf32>
    %6 = vector.shape_cast %5 : vector<1x8x128xf32> to vector<8x128xf32>
    %7 = vector.extract_strided_slice %4 {offsets = [1, 0, 0], sizes = [1, 8, 128], strides = [1, 1, 1]} : vector<3x8x128xf32> to vector<1x8x128xf32>
    %8 = vector.shape_cast %7 : vector<1x8x128xf32> to vector<8x128xf32>
    %9 = vector.extract_strided_slice %4 {offsets = [2, 0, 0], sizes = [1, 8, 128], strides = [1, 1, 1]} : vector<3x8x128xf32> to vector<1x8x128xf32>
    %10 = vector.shape_cast %9 : vector<1x8x128xf32> to vector<8x128xf32>
    %11 = arith.maximumf %8, %10 : vector<8x128xf32>
    %12 = arith.maximumf %6, %11 : vector<8x128xf32>
    %13 = arith.minimumf %8, %10 : vector<8x128xf32>
    %14 = arith.minimumf %6, %13 : vector<8x128xf32>
    %15 = arith.subf %12, %14 : vector<8x128xf32>
    %cst = arith.constant 9.99999971E-10 : f32
    %16 = vector.broadcast %cst : f32 to vector<8x128xf32>
    %17 = arith.addf %15, %16 : vector<8x128xf32>
    %cst_4 = arith.constant 1.000000e+00 : f32
    %18 = vector.broadcast %cst_4 : f32 to vector<8x128xf32>
    %19 = arith.divf %18, %17 : vector<8x128xf32>
    %20 = arith.cmpf oge, %6, %8 : vector<8x128xf32>
    %21 = arith.cmpf oge, %6, %10 : vector<8x128xf32>
    %22 = arith.andi %20, %21 : vector<8x128xi1>
    %cst_5 = arith.constant dense<true> : vector<8x128xi1>
    %23 = arith.xori %22, %cst_5 : vector<8x128xi1>
    %24 = arith.cmpf oge, %8, %10 : vector<8x128xf32>
    %25 = arith.andi %23, %24 : vector<8x128xi1>
    %cst_6 = arith.constant dense<true> : vector<8x128xi1>
    %26 = arith.xori %22, %cst_6 : vector<8x128xi1>
    %cst_7 = arith.constant dense<true> : vector<8x128xi1>
    %27 = arith.xori %25, %cst_7 : vector<8x128xi1>
    %28 = arith.andi %26, %27 : vector<8x128xi1>
    %29 = arith.subf %8, %10 : vector<8x128xf32>
    %30 = arith.mulf %29, %19 : vector<8x128xf32>
    %cst_8 = arith.constant 0.000000e+00 : f32
    %31 = vector.broadcast %cst_8 : f32 to vector<8x128xf32>
    %32 = arith.cmpf olt, %30, %31 : vector<8x128xf32>
    %cst_9 = arith.constant 6.000000e+00 : f32
    %33 = vector.broadcast %cst_9 : f32 to vector<8x128xf32>
    %34 = arith.addf %30, %33 : vector<8x128xf32>
    %35 = arith.select %32, %34, %30 : vector<8x128xi1>, vector<8x128xf32>
    %cst_10 = arith.constant 0.000000e+00 : f32
    %36 = vector.broadcast %cst_10 : f32 to vector<8x128xf32>
    %37 = arith.select %22, %35, %36 : vector<8x128xi1>, vector<8x128xf32>
    %38 = arith.subf %10, %6 : vector<8x128xf32>
    %39 = arith.mulf %38, %19 : vector<8x128xf32>
    %cst_11 = arith.constant 2.000000e+00 : f32
    %40 = vector.broadcast %cst_11 : f32 to vector<8x128xf32>
    %41 = arith.addf %39, %40 : vector<8x128xf32>
    %42 = arith.select %25, %41, %37 : vector<8x128xi1>, vector<8x128xf32>
    %43 = arith.subf %6, %8 : vector<8x128xf32>
    %44 = arith.mulf %43, %19 : vector<8x128xf32>
    %cst_12 = arith.constant 4.000000e+00 : f32
    %45 = vector.broadcast %cst_12 : f32 to vector<8x128xf32>
    %46 = arith.addf %44, %45 : vector<8x128xf32>
    %47 = arith.select %28, %46, %42 : vector<8x128xi1>, vector<8x128xf32>
    %cst_13 = arith.constant 0.000000e+00 : f32
    %48 = vector.broadcast %cst_13 : f32 to vector<8x128xf32>
    %49 = arith.cmpf one, %15, %48 : vector<8x128xf32>
    %50 = arith.addf %12, %14 : vector<8x128xf32>
    %cst_14 = arith.constant 1.000000e+00 : f32
    %51 = vector.broadcast %cst_14 : f32 to vector<8x128xf32>
    %52 = arith.subf %50, %51 : vector<8x128xf32>
    %53 = math.absf %52 : vector<8x128xf32>
    %cst_15 = arith.constant 1.000000e+00 : f32
    %54 = vector.broadcast %cst_15 : f32 to vector<8x128xf32>
    %55 = arith.subf %54, %53 : vector<8x128xf32>
    %56 = arith.divf %15, %55 : vector<8x128xf32>
    %cst_16 = arith.constant 0.000000e+00 : f32
    %57 = vector.broadcast %cst_16 : f32 to vector<8x128xf32>
    %58 = arith.select %49, %56, %57 : vector<8x128xi1>, vector<8x128xf32>
    %59 = arith.addf %12, %14 : vector<8x128xf32>
    %cst_17 = arith.constant 5.000000e-01 : f32
    %60 = vector.broadcast %cst_17 : f32 to vector<8x128xf32>
    %61 = arith.mulf %59, %60 : vector<8x128xf32>
    %62 = vector.broadcast %0 : f32 to vector<8x128xf32>
    %63 = arith.subf %58, %62 : vector<8x128xf32>
    %cst_18 = arith.constant 1.000000e+03 : f32
    %64 = vector.broadcast %cst_18 : f32 to vector<8x128xf32>
    %65 = arith.mulf %63, %64 : vector<8x128xf32>
    %cst_19 = arith.constant 0.00999999977 : f32
    %66 = vector.broadcast %cst_19 : f32 to vector<8x128xf32>
    %67 = arith.subf %65, %66 : vector<8x128xf32>
    %cst_20 = arith.constant 1.000000e+00 : f32
    %68 = vector.broadcast %cst_20 : f32 to vector<8x128xf32>
    %69 = arith.cmpf oge, %67, %68 : vector<8x128xf32>
    %70 = vector.broadcast %1 : f32 to vector<8x128xf32>
    %71 = arith.subf %70, %61 : vector<8x128xf32>
    %cst_21 = arith.constant 1.000000e+03 : f32
    %72 = vector.broadcast %cst_21 : f32 to vector<8x128xf32>
    %73 = arith.mulf %71, %72 : vector<8x128xf32>
    %cst_22 = arith.constant 0.00999999977 : f32
    %74 = vector.broadcast %cst_22 : f32 to vector<8x128xf32>
    %75 = arith.subf %73, %74 : vector<8x128xf32>
    %cst_23 = arith.constant 0.000000e+00 : f32
    %76 = vector.broadcast %cst_23 : f32 to vector<8x128xf32>
    %77 = arith.cmpf ole, %75, %76 : vector<8x128xf32>
    %78 = arith.andi %69, %77 : vector<8x128xi1>
    %79 = vector.broadcast %2 : f32 to vector<8x128xf32>
    %80 = arith.subf %61, %79 : vector<8x128xf32>
    %cst_24 = arith.constant 1.000000e+03 : f32
    %81 = vector.broadcast %cst_24 : f32 to vector<8x128xf32>
    %82 = arith.mulf %80, %81 : vector<8x128xf32>
    %cst_25 = arith.constant 0.00999999977 : f32
    %83 = vector.broadcast %cst_25 : f32 to vector<8x128xf32>
    %84 = arith.subf %82, %83 : vector<8x128xf32>
    %cst_26 = arith.constant 0.000000e+00 : f32
    %85 = vector.broadcast %cst_26 : f32 to vector<8x128xf32>
    %86 = arith.cmpf ole, %84, %85 : vector<8x128xf32>
    %87 = arith.andi %78, %86 : vector<8x128xi1>
    %cst_27 = arith.constant 5.000000e+00 : f32
    %88 = vector.broadcast %cst_27 : f32 to vector<8x128xf32>
    %89 = arith.addf %88, %47 : vector<8x128xf32>
    %cst_28 = arith.constant 6.000000e+00 : f32
    %90 = vector.broadcast %cst_28 : f32 to vector<8x128xf32>
    %91 = arith.cmpf oge, %89, %90 : vector<8x128xf32>
    %cst_29 = arith.constant 6.000000e+00 : f32
    %92 = vector.broadcast %cst_29 : f32 to vector<8x128xf32>
    %93 = arith.subf %89, %92 : vector<8x128xf32>
    %94 = arith.select %91, %93, %89 : vector<8x128xi1>, vector<8x128xf32>
    %cst_30 = arith.constant 4.000000e+00 : f32
    %95 = vector.broadcast %cst_30 : f32 to vector<8x128xf32>
    %96 = arith.subf %95, %94 : vector<8x128xf32>
    %97 = arith.minimumf %94, %96 : vector<8x128xf32>
    %cst_31 = arith.constant 0.000000e+00 : f32
    %cst_32 = arith.constant 1.000000e+00 : f32
    %98 = vector.broadcast %cst_31 : f32 to vector<8x128xf32>
    %99 = arith.maximumf %98, %97 : vector<8x128xf32>
    %100 = vector.broadcast %cst_32 : f32 to vector<8x128xf32>
    %101 = arith.minimumf %100, %99 : vector<8x128xf32>
    %cst_33 = arith.constant 1.000000e+00 : f32
    %102 = vector.broadcast %cst_33 : f32 to vector<8x128xf32>
    %103 = arith.subf %102, %101 : vector<8x128xf32>
    %104 = arith.select %87, %103, %61 : vector<8x128xi1>, vector<8x128xf32>
    %c0_34 = arith.constant 0 : index
    %c0_35 = arith.constant 0 : index
    %c0_36 = arith.constant 0 : index
    %c0_37 = arith.constant 0 : index
    %105 = vector.load %arg4[%c0_34, %c0_35, %c0_36, %c0_37] : memref<1x3x8x128xf32, #tpu.memory_space<vmem>>, vector<1x1x8x128xf32>
    %106 = vector.shape_cast %105 : vector<1x1x8x128xf32> to vector<8x128xf32>
    %107 = vector.shape_cast %104 : vector<8x128xf32> to vector<1x1x8x128xf32>
    tpu.vector_store %arg4[%c0_34, %c0_35, %c0_36, %c0_37], %107 {strides = array<i32>} : memref<1x3x8x128xf32, #tpu.memory_space<vmem>>, vector<1x1x8x128xf32>,
    %cst_38 = arith.constant 3.000000e+00 : f32
    %108 = vector.broadcast %cst_38 : f32 to vector<8x128xf32>
    %109 = arith.addf %108, %47 : vector<8x128xf32>
    %cst_39 = arith.constant 6.000000e+00 : f32
    %110 = vector.broadcast %cst_39 : f32 to vector<8x128xf32>
    %111 = arith.cmpf oge, %109, %110 : vector<8x128xf32>
    %cst_40 = arith.constant 6.000000e+00 : f32
    %112 = vector.broadcast %cst_40 : f32 to vector<8x128xf32>
    %113 = arith.subf %109, %112 : vector<8x128xf32>
    %114 = arith.select %111, %113, %109 : vector<8x128xi1>, vector<8x128xf32>
    %cst_41 = arith.constant 4.000000e+00 : f32
    %115 = vector.broadcast %cst_41 : f32 to vector<8x128xf32>
    %116 = arith.subf %115, %114 : vector<8x128xf32>
    %117 = arith.minimumf %114, %116 : vector<8x128xf32>
    %cst_42 = arith.constant 0.000000e+00 : f32
    %cst_43 = arith.constant 1.000000e+00 : f32
    %118 = vector.broadcast %cst_42 : f32 to vector<8x128xf32>
    %119 = arith.maximumf %118, %117 : vector<8x128xf32>
    %120 = vector.broadcast %cst_43 : f32 to vector<8x128xf32>
    %121 = arith.minimumf %120, %119 : vector<8x128xf32>
    %cst_44 = arith.constant 1.000000e+00 : f32
    %122 = vector.broadcast %cst_44 : f32 to vector<8x128xf32>
    %123 = arith.subf %122, %121 : vector<8x128xf32>
    %124 = arith.select %87, %123, %61 : vector<8x128xi1>, vector<8x128xf32>
    %c0_45 = arith.constant 0 : index
    %c1_46 = arith.constant 1 : index
    %c0_47 = arith.constant 0 : index
    %c0_48 = arith.constant 0 : index
    %125 = vector.load %arg4[%c0_45, %c1_46, %c0_47, %c0_48] : memref<1x3x8x128xf32, #tpu.memory_space<vmem>>, vector<1x1x8x128xf32>
    %126 = vector.shape_cast %125 : vector<1x1x8x128xf32> to vector<8x128xf32>
    %127 = vector.shape_cast %124 : vector<8x128xf32> to vector<1x1x8x128xf32>
    tpu.vector_store %arg4[%c0_45, %c1_46, %c0_47, %c0_48], %127 {strides = array<i32>} : memref<1x3x8x128xf32, #tpu.memory_space<vmem>>, vector<1x1x8x128xf32>,
    %cst_49 = arith.constant 1.000000e+00 : f32
    %128 = vector.broadcast %cst_49 : f32 to vector<8x128xf32>
    %129 = arith.addf %128, %47 : vector<8x128xf32>
    %cst_50 = arith.constant 6.000000e+00 : f32
    %130 = vector.broadcast %cst_50 : f32 to vector<8x128xf32>
    %131 = arith.cmpf oge, %129, %130 : vector<8x128xf32>
    %cst_51 = arith.constant 6.000000e+00 : f32
    %132 = vector.broadcast %cst_51 : f32 to vector<8x128xf32>
    %133 = arith.subf %129, %132 : vector<8x128xf32>
    %134 = arith.select %131, %133, %129 : vector<8x128xi1>, vector<8x128xf32>
    %cst_52 = arith.constant 4.000000e+00 : f32
    %135 = vector.broadcast %cst_52 : f32 to vector<8x128xf32>
    %136 = arith.subf %135, %134 : vector<8x128xf32>
    %137 = arith.minimumf %134, %136 : vector<8x128xf32>
    %cst_53 = arith.constant 0.000000e+00 : f32
    %cst_54 = arith.constant 1.000000e+00 : f32
    %138 = vector.broadcast %cst_53 : f32 to vector<8x128xf32>
    %139 = arith.maximumf %138, %137 : vector<8x128xf32>
    %140 = vector.broadcast %cst_54 : f32 to vector<8x128xf32>
    %141 = arith.minimumf %140, %139 : vector<8x128xf32>
    %cst_55 = arith.constant 1.000000e+00 : f32
    %142 = vector.broadcast %cst_55 : f32 to vector<8x128xf32>
    %143 = arith.subf %142, %141 : vector<8x128xf32>
    %144 = arith.select %87, %143, %61 : vector<8x128xi1>, vector<8x128xf32>
    %c0_56 = arith.constant 0 : index
    %c2_57 = arith.constant 2 : index
    %c0_58 = arith.constant 0 : index
    %c0_59 = arith.constant 0 : index
    %145 = vector.load %arg4[%c0_56, %c2_57, %c0_58, %c0_59] : memref<1x3x8x128xf32, #tpu.memory_space<vmem>>, vector<1x1x8x128xf32>
    %146 = vector.shape_cast %145 : vector<1x1x8x128xf32> to vector<8x128xf32>
    %147 = vector.shape_cast %144 : vector<8x128xf32> to vector<1x1x8x128xf32>
    tpu.vector_store %arg4[%c0_56, %c2_57, %c0_58, %c0_59], %147 {strides = array<i32>} : memref<1x3x8x128xf32, #tpu.memory_space<vmem>>, vector<1x1x8x128xf32>,
    return
  }
  func.func @transform_0(%arg0: i32, %arg1: i32) -> i32 {
    %c0_i32 = arith.constant 0 : i32
    %c0_i32_0 = arith.constant 0 : i32
    return %c0_i32 : i32
  }
  func.func @transform_1(%arg0: i32, %arg1: i32) -> (i32, i32, i32, i32) {
    %c0_i32 = arith.constant 0 : i32
    %c0_i32_0 = arith.constant 0 : i32
    %c0_i32_1 = arith.constant 0 : i32
    return %arg0, %c0_i32, %arg1, %c0_i32_0 : i32, i32, i32, i32
  }
  func.func @transform_2(%arg0: i32, %arg1: i32) -> (i32, i32, i32, i32) {
    %c0_i32 = arith.constant 0 : i32
    %c0_i32_0 = arith.constant 0 : i32
    %c0_i32_1 = arith.constant 0 : i32
    return %arg0, %c0_i32, %arg1, %c0_i32_0 : i32, i32, i32, i32
  }
}

</mosaic_0001>

<bundles_post_ra>
// kernel: tpu_custom_call.1
= control target key start
LH: loop header
LB: loop body
LE: loop exit
PB: predicated region body
PF: predicated region fallthrough
CT: control target
= control target key end

     0   :  { %7 = vsyncpa [#allocation5], 0  ;;  %s860_s0 = inlined_call_operand.hbm [shape: f32[3], index: 0, kind: input, shape index: {}]   ;;  %s861_s1 = inlined_call_operand.hbm [shape: f32[2,3,8,128], index: 1, kind: input, shape index: {}]   ;;  %s862_s2 = inlined_call_operand.hbm [shape: f32[2,3,8,128], index: 2, kind: output, shape index: {}]  }
   0x1   :  { %8 = vsyncpa [#allocation3], 0 }
   0x2   :  { %10 = vsyncpa [#allocation3 + $0x1], 0 }
   0x3   :  { %11 = vsyncpa [#allocation4], 0 }
   0x4   :  { %13 = vsyncpa [#allocation4 + $0x1], 0  ;;  %s656_s9 = smov 0   ;;  %s658_s10 = smov 0  }
   0x5   :  { %s660_s11 = smov 0   ;;  %s662_s12 = smov 0  }
   0x6   :  { %s664_s13 = smov 0   ;;  %s666_s14 = smov 0  }
   0x7 LB: > { %s400_s15 = sadd.s32 4294967295, %s631_s14   ;;  %s401_s16 = sadd.s32 4294967294, %s631_s14   ;;  %s631_s14 = sphi %s666_s14, %s19_s14   ;;  %s627_s13 = sphi %s664_s13, %s883_s13   ;;  %s623_s12 = sphi %s662_s12, %s882_s12   ;;  %s619_s11 = sphi %s660_s11, %s881_s11   ;;  %s615_s10 = sphi %s658_s10, %s880_s10   ;;  %s611_s9 = sphi %s656_s9, %s879_s9  }
   0x8   : > { %s61_s17 = sadd.s32 1, %s619_s11  ;;  %p68_p0 = scmp.ne.s32.totalorder %s619_s11, %s615_s10 }
   0x9   : > { %p69_p1 = scmp.eq.s32.totalorder %s631_s14, 0  ;;  %p74_p2 = scmp.ne.s32.totalorder %s615_s10, %s611_s9 }
   0xa   : > { %p694_p3 = scmp.eq.s32.totalorder %s400_s15, 0  ;;  %p100_p4 = scmp.eq.s32.totalorder %s400_s15, 1 }
   0xb   : > { %p70_p5 = por %p69_p1, %p68_p0  ;;  %p106_p6 = scmp.eq.s32.totalorder %s401_s16, 1 }
   0xc   : > { %p700_p7 = por %p694_p3, %p74_p2  ;;  %p704_p8 = por %p100_p4, %p68_p0 }
   0xd   : > { %p708_p9 = por %p106_p6, %p74_p2  ;;  %p402_p10 = scmp.ge.s32.totalorder %s631_s14, 1 }
   0xe   : > { %p113_p11 = scmp.lt.s32.totalorder %s631_s14, 3  ;;  %p447_p1 = scmp.lt.s32.totalorder %s631_s14, 2 }
   0xf   : > { %s866_s21 = scalar_select %p708_p9, 1, 0 }
  0x10   : > { %p715_p13 = pnand %p402_p10, %p113_p11  ;;  %s135_s23 = sand.u32 1, %s619_s11  }
  0x11   : > { %p723_p2 = pnand %p447_p1, %p70_p5  ;;  %s31_s25 = sadd.s32 1, %s627_s13 }
  0x12   : > { %p434_p0 = pneg %p715_p13  ;;  %s422_s26 = smul.u32 24, %s135_s23 }
  0x13   : > { %p33_p6 = scmp.ge.s32.totalorder %s31_s25, 2  ;;  %s633_s27 = smov [#allocation2]  }
  0x14   : > { %p435_p4 = pnand %p434_p0, %p694_p3  ;;  %s423_s30 = smul.u32 384, %s627_s13 }
  0x15   : > { %s885_s25 = smov (%p33_p6, %s31_s25), 0  ;;  %s139_s4 = scalar_lea.vmem [#allocation6], %s422_s26 }
  0x16   : > { %437 = dma.hbm_to_smem (!%p435_p4), %s860_s0, 16, %s633_s27, [#allocation5]  }
  0x17   : > { %s56_s3 = ssub.s32 %s627_s13, %s885_s25  ;;  %s147_s5 = sshll.u32 %s139_s4, 4  ;;  %s148_s5 = int_to_ptr.vmem [resolvable:$true] %s147_s5 }
  0x18   : > { %p59_p5 = scmp.eq.s32.totalorder %s56_s3, 0  ;;  %s146_s8 = scalar_lea.hbm %s861_s1, %s423_s30 }
  0x19   : > { %s136_s16 = scalar_lea.sflag [#allocation3], %s135_s23  ;;  %p521_p10 = pneg %p723_p2 }
  0x1a   : > { %s744_s15 = scalar_select %p59_p5, %s619_s11, %s61_s17  }
  0x1b   : > { %s532_s27 = scalar_lea.vmem %s148_s5, 384  ;;  %s634_s28 = smov [#allocation6]  }
  0x1c   : > { %p533_p11 = scmp.ne.s32.totalorder %s148_s5, %s532_s27  ;;  %s537_s29 = sshll.u32 %s634_s28, 4  ;;  %s538_s29 = int_to_ptr.vmem [resolvable:$false] %s537_s29 }
  0x1d   : > { %s539_s26 = scalar_lea.vmem %s538_s29, 768  ;;  %p540_p4 = scmp.lt.s32.totalorder %s148_s5, %s538_s29 }
  0x1e   : > { %p535_p1 = pnand %p533_p11, %p521_p10  ;;  %p541_p6 = scmp.lt.s32.totalorder %s539_s26, %s532_s27 }
  0x20   : > { %p536_p0 = pneg %p535_p1  ;;  %p542_p12 = por %p541_p6, %p540_p4 }
  0x22   : > { %p543_p9 = pnand %p542_p12, %p536_p0 }
  0x24   : > { %546 = shalt.err (!%p543_p9)
}
  0x25   : > { %s635_s30 = smov 128   ;;  %s636_s17 = smov 8  }
  0x26   : > { %441 = dma.hbm_to_vmem [thread:$0]  (!%p723_p2), %s146_s8, 384, %s148_s5, %s136_s16, %s635_s30, %s635_s30, %s636_s17  }
  0x27   : > { %159 = sbr.rel (%p715_p13) target bundleno = 114 (0x72), region = 28 }
  0x2c   : > { %598 = dma.done.wait (%p694_p3), [#allocation5], 16  }
  0x2d   : > { %600 = vsyncadd (%p694_p3), [#allocation5], 4294967280  ;;  %s757_s23 = sand.u32 1, %s615_s10  }
  0x2e   : > { %s424_s3 = smul.u32 24, %s757_s23  ;;  %s166_s4 = scalar_lea.sflag [#allocation3], %s757_s23 }
  0x30   : > { %s169_s24 = scalar_lea.vmem [#allocation6], %s424_s3 }
  0x31   : > { %602 = dma.done.wait (%p700_p7), %s166_s4, 384  }
  0x32   : > { %604 = vsyncadd (%p700_p7), %s166_s4, 4294966912 }
  0x33   : > { %174 = sfence }
  0x34   : > { %v194_v0 = vld [vmem:[%s169_s24] sm:$0xff]  ;;  %v195_v1 = vld [vmem:[%s169_s24 + $0x8] sm:$0xff]  ;;  %v196_v2 = vld [vmem:[%s169_s24 + $0x10] sm:$0xff]  ;;  %s408_s18 = sld [smem:[#allocation2 + $0x1]]  ;;  %vm637_vm3 = vmmov 1   ;;  %s190_s5 = scalar_lea.vmem [#allocation7], %s424_s3 }
  0x35   : > { %v197_v3 = vmax.f32 %v195_v1, %v196_v2  ;;  %v199_v4 = vmin.f32 %v195_v1, %v196_v2  ;;  %vm205_vm0 = vcmp.ge.f32.partialorder %v194_v0, %v195_v1  ;;  %vm206_vm1 = vcmp.ge.f32.partialorder %v194_v0, %v196_v2  ;;  %s409_s19 = sld [smem:[#allocation2 + $0x2]]  ;;  %s303_s6 = sshll.u32 %s190_s5, 4  ;;  %s804_s6 = int_to_ptr.vmem [resolvable:$true] %s303_s6 }
  0x36   : > { %vm767_vm2 = vmand %vm205_vm0, %vm206_vm1  ;;  %vm209_vm5 = vcmp.ge.f32.partialorder %v195_v1, %v196_v2  ;;  %s191_s22 = sld [smem:[#allocation2]]  ;;  %v213_v15 = vsub.f32 %v195_v1, %v196_v2  ;;  %v219_v16 = vsub.f32 %v196_v2, %v194_v0  ;;  %v223_v17 = vsub.f32 %v194_v0, %v195_v1  ;;  %s425_s7 = smul.u32 384, %s623_s12 }
  0x37   : > { %v198_v5 = vmax.f32 %v194_v0, %v197_v3  ;;  %v200_v6 = vmin.f32 %v194_v0, %v199_v4  ;;  %vm773_vm4 = vmxor %vm767_vm2, %vm637_vm3  ;;  %s289_s12 = scalar_lea.sflag [#allocation4], %s757_s23  ;;  %s547_s28 = scalar_lea.vmem %s804_s6, 384 }
  0x38   : > { %vm781_vm6 = vmand %vm773_vm4, %vm209_vm5  ;;  %s811_s27 = scalar_lea.hbm %s862_s2, %s425_s7  ;;  %p548_p3 = scmp.ne.s32.totalorder %s804_s6, %s547_s28 }
  0x39   : > { %v201_v7 = vsub.f32 %v198_v5, %v200_v6  ;;  %v228_v8 = vadd.f32 %v200_v6, %v198_v5  ;;  %vm787_vm7 = vmxor %vm781_vm6, %vm637_vm3  ;;  %s638_s29 = smov [#allocation7]  }
  0x3a   : > { %v241_v20 = vstv %s408_s18  ;;  %vm212_vm10 = vmand %vm773_vm4, %vm787_vm7  ;;  %p549_p7 = pnand %p548_p3, %p704_p8  ;;  %s551_s26 = sshll.u32 %s638_s29, 4  ;;  %s552_s26 = int_to_ptr.vmem [resolvable:$false] %s551_s26 }
  0x3b   : > { %v202_v9 = vadd.f32 1e-09, %v201_v7  ;;  %v410_v10 = vadd.f32 -1.0, %v228_v8  ;;  %v777_v18 = vmul.f32 0.5, %v228_v8  ;;  %v247_v29 = vstv %s409_s19  ;;  %s553_s30 = scalar_lea.vmem %s552_s26, 768  ;;  %p554_p12 = scmp.lt.s32.totalorder %s804_s6, %s552_s26 }
  0x3c   : > { %vm227_vm9 = vcmp.ne.f32.partialorder %v201_v7, 0.0  ;;  %v236_v34 = vstv %s191_s22  ;;  %p550_p9 = pneg %p549_p7  ;;  %p555_p13 = scmp.lt.s32.totalorder %s553_s30, %s547_s28 }
  0x3d   : > { %504 = vrcp.f32 %v202_v9  ;;  %v230_v11 = vand.u32 2147483647, %v410_v10  ;;  %v242_v26 = vsub.f32 %v241_v20, %v777_v18  ;;  %v248_v37 = vsub.f32 %v777_v18, %v247_v29 }
  0x3e   : > { %p556_p2 = por %p555_p13, %p554_p12 }
  0x3f   : > { %v231_v12 = vsub.f32 1.0, %v230_v11  ;;  %v243_v36 = vmul.f32 1000.0, %v242_v26  ;;  %v249_v47 = vmul.f32 1000.0, %v248_v37 }
  0x40   : > { %p557_p5 = pnand %p556_p2, %p550_p9 }
  0x41   : > { %506 = vrcp.f32 %v231_v12  ;;  %v412_v46 = vadd.f32 -0.01, %v243_v36  ;;  %v413_v54 = vadd.f32 -0.01, %v249_v47 }
  0x43   : > { %vm245_vm15 = vcmp.le.f32.partialorder %v412_v46, 0.0  ;;  %vm251_vm1 = vcmp.le.f32.partialorder %v413_v54, 0.0 }
  0x4a   : > { %v505_v21 = vpop.eup %504 }
  0x4b   : > { %v214_v22 = vmul.f32 %v505_v21, %v213_v15  ;;  %v220_v23 = vmul.f32 %v505_v21, %v219_v16  ;;  %v224_v24 = vmul.f32 %v505_v21, %v223_v17 }
  0x4d   : > { %vm215_vm8 = vcmp.lt.f32.partialorder %v214_v22, 0.0  ;;  %v216_v27 = vadd.f32 6.0, %v214_v22  ;;  %v221_v28 = vadd.f32 2.0, %v220_v23  ;;  %v225_v31 = vadd.f32 4.0, %v224_v24 }
  0x4e   : > { %v507_v30 = vpop.eup %506 }
  0x4f   : > { %v217_v32 = vsel %vm215_vm8, %v216_v27, %v214_v22  ;;  %v233_v33 = vmul.f32 %v507_v30, %v201_v7 }
  0x50   : > { %v218_v35 = vsel %vm767_vm2, %v217_v32, 0.0 }
  0x51   : > { %v222_v38 = vsel %vm781_vm6, %v221_v28, %v218_v35  ;;  %v234_v39 = vsel %vm227_vm9, %v233_v33, 0.0 }
  0x52   : > { %v226_v40 = vsel %vm212_vm10, %v225_v31, %v222_v38  ;;  %v237_v41 = vsub.f32 %v234_v39, %v236_v34 }
  0x53   : > { %v253_v42 = vadd.f32 5.0, %v226_v40  ;;  %v264_v43 = vadd.f32 3.0, %v226_v40  ;;  %v276_v44 = vadd.f32 1.0, %v226_v40 }
  0x54   : > { %v238_v45 = vmul.f32 1000.0, %v237_v41 }
  0x55   : > { %vm254_vm11 = vcmp.ge.f32.partialorder %v253_v42, 6.0  ;;  %v414_v48 = vadd.f32 -6.0, %v253_v42  ;;  %vm265_vm12 = vcmp.ge.f32.partialorder %v264_v43, 6.0  ;;  %v415_v49 = vadd.f32 -6.0, %v264_v43 }
  0x56   : > { %v411_v50 = vadd.f32 -0.01, %v238_v45  ;;  %vm277_vm13 = vcmp.ge.f32.partialorder %v276_v44, 6.0  ;;  %v417_v51 = vadd.f32 -6.0, %v276_v44 }
  0x57   : > { %v256_v52 = vsel %vm254_vm11, %v414_v48, %v253_v42  ;;  %v267_v53 = vsel %vm265_vm12, %v415_v49, %v264_v43 }
  0x58   : > { %v257_v55 = vsub.f32 4.0, %v256_v52  ;;  %v268_v56 = vsub.f32 4.0, %v267_v53  ;;  %v279_v57 = vsel %vm277_vm13, %v417_v51, %v276_v44  ;;  %vm240_vm14 = vcmp.ge.f32.partialorder %v411_v50, 1.0 }
  0x59   : > { %v280_v58 = vsub.f32 4.0, %v279_v57  ;;  %vm246_vm0 = vmand %vm240_vm14, %vm245_vm15 }
  0x5a   : > { %v258_v59 = vmin.f32 %v256_v52, %v257_v55  ;;  %v269_v60 = vmin.f32 %v267_v53, %v268_v56  ;;  %vm252_vm2 = vmand %vm246_vm0, %vm251_vm1 }
  0x5b   : > { %v281_v61 = vmin.f32 %v279_v57, %v280_v58 }
  0x5c   : > { %v259_v62 = vmax.f32 %v258_v59, 0.0  ;;  %v270_v63 = vmax.f32 %v269_v60, 0.0 }
  0x5d   : > { %v282_v0 = vmax.f32 %v281_v61, 0.0 }
  0x5e   : > { %v260_v1 = vmin.f32 %v259_v62, 1.0  ;;  %v271_v2 = vmin.f32 %v270_v63, 1.0 }
  0x5f   : > { %v283_v3 = vmin.f32 %v282_v0, 1.0 }
  0x60   : > { %v261_v4 = vsub.f32 1.0, %v260_v1  ;;  %v272_v5 = vsub.f32 1.0, %v271_v2 }
  0x61   : > { %v284_v6 = vsub.f32 1.0, %v283_v3 }
  0x62   : > { %v262_v7 = vsel %vm252_vm2, %v261_v4, %v777_v18  ;;  %v273_v8 = vsel %vm252_vm2, %v272_v5, %v777_v18 }
  0x63   : > { %263 = vst [vmem:[%s190_s5] sm:$0xff] %v262_v7  ;;  %416 = vst [vmem:[%s190_s5 + $0x8] sm:$0xff] %v273_v8  ;;  %v285_v9 = vsel %vm252_vm2, %v284_v6, %v777_v18 }
  0x64   : > { %418 = vst [vmem:[%s190_s5 + $0x10] sm:$0xff] %v285_v9 }
  0x65   : > { %560 = shalt.err (!%p557_p5)
}
  0x66   : > { %s561_s17 = scalar_lea.hbm %s811_s27, 384  ;;  %s565_s24 = scalar_lea.hbm %s862_s2, 768 }
  0x67   : > { %p562_p10 = scmp.ne.s32.totalorder %s811_s27, %s561_s17  ;;  %p566_p0 = scmp.lt.s32.totalorder %s811_s27, %s862_s2 }
  0x68   : > { %p567_p4 = scmp.lt.s32.totalorder %s565_s24, %s561_s17 }
  0x69   : > { %p563_p11 = pnand %p562_p10, %p704_p8 }
  0x6a   : > { %p568_p6 = por %p567_p4, %p566_p0 }
  0x6b   : > { %p564_p1 = pneg %p563_p11 }
  0x6d   : > { %p569_p3 = pnand %p568_p6, %p564_p1 }
  0x6f   : > { %572 = shalt.err (!%p569_p3)
}
  0x70   : > { %s639_s22 = smov 128   ;;  %s640_s5 = smov 8  }
  0x71   : > { %432 = dma.vmem_to_hbm [thread:$0]  (%p704_p8), %s804_s6, 384, %s811_s27, %s289_s12, %s639_s22, %s639_s22, %s640_s5  }
  0x72 PF: > { %s318_s7 = sand.u32 1, %s611_s9   ;;  %p877_p7 = scmp.ne.s32.totalorder %s866_s21, 0 }
  0x73   : > { %p878_p9 = scmp.ge.s32.totalorder %s631_s14, 2  ;;  %s319_s8 = scalar_lea.sflag [#allocation4], %s318_s7 }
  0x75   : > { %p443_p12 = pnand %p878_p9, %p877_p7 }
  0x77   : > { %p444_p13 = pneg %p443_p12 }
  0x79   : > { %606 = dma.done.wait (%p444_p13), %s319_s8, 384  }
  0x7a   : > { %608 = vsyncadd (%p444_p13), %s319_s8, 4294966912  ;;  %s19_s14 = sadd.s32 1, %s631_s14   ;;  %s879_s9 = smov %s615_s10 }
  0x7b   : > { %p16_p2 = scmp.ge.s32.totalorder %s19_s14, 4   ;;  %s880_s10 = smov %s619_s11 }
  0x7c   : > { %s881_s11 = smov %s744_s15  ;;  %s882_s12 = smov %s627_s13 }
  0x7d   : > { %s883_s13 = smov %s885_s25  ;;  %18 = sbr.rel (!%p16_p2) target bundleno = 7 (0x7), region = 80 }
  0x82   :  { %324 = vsyncpa [#allocation3], 1 }
  0x83   :  { %326 = vsyncpa [#allocation3 + $0x1], 1 }
  0x84   :  { %327 = vsyncpa [#allocation4], 1 }
  0x85   :  { %329 = vsyncpa [#allocation4 + $0x1], 1 }
  0x86   :  { %330 = vsyncpa [#allocation5], 1 }
  0x87   :  { %332 = vsyncpa [#allocation5 + $0x1], 1 }

</bundles_post_ra>
